<compile_context>
chip_gen: v6e
topology: v6e:2x2x1
jax: 0.10.0
libtpu: 0.0.40
codegen_flags: <defaults>
</compile_context>

<pallas_src>
import functools
import math

import jax
import jax.numpy as jnp
from jax.experimental import pallas as pl
from jax.experimental.pallas import tpu as pltpu


# ------------------------------ small helpers ------------------------------ #

def _round_up(n, m):
    return ((n + m - 1) // m) * m


def _largest_divisor(n, candidates):
    for c in candidates:
        if n % c == 0:
            return c
    return None


# -------------------- GCNConv(in_channels, 1) score kernel ----------------- #
# score^T (1, Np) = h^T (1, Np) @ A_hat^T (Np, Np) + b   (lane-dense row)

def _score_kernel(b_ref, h_ref, at_ref, o_ref, acc_ref, *, tk):
    # b_ref: (1,) f32 in SMEM; h_ref: (1, Np) bf16 resident in VMEM;
    # at_ref: (tk, tn) bf16; o_ref/acc_ref: (1, tn) f32
    k = pl.program_id(1)

    @pl.when(k == 0)
    def _():
        acc_ref[...] = jnp.zeros_like(acc_ref)

    start = pl.multiple_of(k * tk, tk)
    h_blk = h_ref[:, pl.ds(start, tk)]                       # (1, tk) bf16
    acc_ref[...] += jnp.dot(h_blk, at_ref[...],
                            preferred_element_type=jnp.float32)

    @pl.when(k == pl.num_programs(1) - 1)
    def _():
        o_ref[...] = acc_ref[...] + b_ref[0]                 # bias folded in


def gcn_score(a_hat_t, h_row, bias):
    """score_row (1, Np) = h_row @ A_hat^T + b, tiled & pipelined."""
    np_ = a_hat_t.shape[0]                      # multiple of 512 by padding
    # Output-column tile: 512 when there are >= 2 such tiles, otherwise Np/2
    # so the "parallel" axis still has 2 tiles (keeps both v7x cores busy).
    tn = 512 if np_ >= 1024 else np_ // 2
    # Reduction tile: as large as possible while one A_hat^T tile stays
    # <= 2 MiB bf16, so a 3-deep pipeline fits v5e's scoped-VMEM budget.
    tk_cands = tuple(c for c in (2048, 1024, 512)
                     if c * tn * 2 <= 2 * 1024 * 1024)
    tk = _largest_divisor(np_, tk_cands)        # 512 always divides
    grid = (np_ // tn, np_ // tk)

    at_kwargs = {}
    if grid[0] * grid[1] >= 4:                  # only buffer deeper on real grids
        at_kwargs["pipeline_mode"] = pl.Buffered(3)

    cost = pl.CostEstimate(
        flops=2 * np_ * np_,
        transcendentals=0,
        bytes_accessed=(a_hat_t.size * a_hat_t.dtype.itemsize
                        + h_row.size * h_row.dtype.itemsize
                        + 4 * np_),
    )
    return pl.pallas_call(
        functools.partial(_score_kernel, tk=tk),
        out_shape=jax.ShapeDtypeStruct((1, np_), jnp.float32),
        grid_spec=pltpu.PrefetchScalarGridSpec(
            num_scalar_prefetch=0,
            grid=grid,
            in_specs=[
                pl.BlockSpec(memory_space=pltpu.MemorySpace.SMEM),    # bias
                pl.BlockSpec((1, np_), lambda j, k: (0, 0)),          # h, resident
                pl.BlockSpec((tk, tn), lambda j, k: (k, j), **at_kwargs),
            ],
            out_specs=pl.BlockSpec((1, tn), lambda j, k: (0, j)),
            scratch_shapes=[pltpu.VMEM((1, tn), jnp.float32)],
        ),
        compiler_params=pltpu.CompilerParams(
            dimension_semantics=("parallel", "arbitrary"),
            vmem_limit_bytes=32 * 1024 * 1024),
        cost_estimate=cost,
    )(bias, h_row, a_hat_t)


# --------------- fused pooling epilogue: gather + tanh scale ---------------- #

def _gather_scale_kernel(perm_ref, x_ref, s_ref, o_ref):
    # perm_ref: SMEM prefetch (used only by the index_maps)
    # x_ref: (1, 1, C) gathered row of x; s_ref: (1, 1, 1) score[perm[i]]
    del perm_ref
    o_ref[...] = x_ref[...] * jnp.tanh(s_ref[...])


def gather_scale(x, score, perm):
    """x[perm] * tanh(score[perm]) with x rows DMA'd directly from HBM."""
    n, c = x.shape
    k = perm.shape[0]
    x3 = x.reshape(n, 1, c)                         # last two dims full-extent
    s3 = score[perm].astype(jnp.float32).reshape(k, 1, 1)
    out = pl.pallas_call(
        _gather_scale_kernel,
        out_shape=jax.ShapeDtypeStruct((k, 1, c), x.dtype),
        grid_spec=pltpu.PrefetchScalarGridSpec(
            num_scalar_prefetch=1,                   # perm -> SMEM
            grid=(k,),
            in_specs=[
                pl.BlockSpec((pl.Element(1), 1, c),
                             lambda i, perm_ref: (perm_ref[i], 0, 0)),
                pl.BlockSpec((1, 1, 1), lambda i, perm_ref: (i, 0, 0)),
            ],
            out_specs=pl.BlockSpec((1, 1, c), lambda i, perm_ref: (i, 0, 0)),
        ),
        compiler_params=pltpu.CompilerParams(
            dimension_semantics=("arbitrary",),
            vmem_limit_bytes=32 * 1024 * 1024),
    )(perm.astype(jnp.int32), x3, s3)
    return out.reshape(k, c)


# ------------------------------- JAX glue ----------------------------------- #

def normalized_adjacency_t(edge_index, num_nodes, num_nodes_padded=None,
                           out_dtype=jnp.bfloat16):
    """A_hat^T where A_hat = D^{-1/2} (A + I) D^{-1/2} (GCNConv default norm),
    A[dst, src] = 1 per edge (messages src -> dst).  Built directly in the
    transposed layout (valid for directed graphs, no symmetry assumption) and
    cast straight to the kernel streaming dtype, zero-padded to Np."""
    # TODO(synk): cache across forward calls / replace the dense build with a
    # CSR scalar-prefetch gather kernel for large sparse graphs (O(E+N) bytes).
    if num_nodes_padded is None:
        num_nodes_padded = num_nodes
    src, dst = edge_index[0], edge_index[1]
    b = jnp.zeros((num_nodes, num_nodes), jnp.float32)
    b = b.at[src, dst].add(1.0)                            # B = A^T
    b = b + jnp.eye(num_nodes, dtype=jnp.float32)          # (A + I)^T
    deg = jnp.sum(b, axis=0)                               # row-sums of (A + I)
    dinv = jnp.where(deg > 0.0, jax.lax.rsqrt(deg), 0.0)
    a_t = (b * dinv[:, None] * dinv[None, :]).astype(out_dtype)   # = A_hat^T
    pad = num_nodes_padded - num_nodes
    if pad:
        a_t = jnp.pad(a_t, ((0, pad), (0, pad)))
    return a_t


def filter_adj(edge_index, edge_attr, perm, num_nodes):
    # TODO(synk): PyG filter_adj returns a variably-sized edge list; JAX needs
    # static shapes, so kept edges are re-indexed and dropped edges marked -1.
    k = perm.shape[0]
    mapping = jnp.full((num_nodes,), -1, dtype=jnp.int32)
    mapping = mapping.at[perm].set(jnp.arange(k, dtype=jnp.int32))
    new_src = mapping[edge_index[0]]
    new_dst = mapping[edge_index[1]]
    mask = (new_src >= 0) & (new_dst >= 0)
    new_edge_index = jnp.where(mask[None, :],
                               jnp.stack([new_src, new_dst], axis=0),
                               jnp.int32(-1))
    if edge_attr is None:
        new_edge_attr = None
    else:
        new_edge_attr = jnp.where(mask[:, None], edge_attr, 0)
    return new_edge_index, new_edge_attr


def gcn_pool_forward(params, x, edge_index, ratio, edge_attr=None, batch=None):
    n, c = x.shape
    if batch is None:
        batch = jnp.zeros((n,), dtype=jnp.int32)

    # Pad node count to a multiple of 512 -> large, overhead-amortizing tiles
    # and always >= 2 output-column tiles for the megacore-parallel axis.
    np_ = _round_up(n, 512)
    a_hat_t = normalized_adjacency_t(edge_index, n, np_)            # bf16

    # h = X @ W is a tiny (N, 1) GEMV, computed once (hoisted out of the tiled
    # A_hat loop) and kept VMEM-resident as a lane-dense (1, Np) bf16 row.
    h_row = jnp.pad((x @ params["w"])[:, 0],
                    (0, np_ - n))[None, :].astype(jnp.bfloat16)
    bias = params["b"].reshape(1).astype(jnp.float32)

    score = gcn_score(a_hat_t, h_row, bias)[0, :n]                  # (N,) f32
    # TODO(synk): the [:n] slice stays in the wrapper; folding it in-kernel
    # would need a ragged final column tile.

    # TODO(synk): top_k ignores `batch` (single-graph assumption, as in the
    # original usage); multi-graph batches need a segmented per-graph top-k.
    k = int(math.ceil(ratio * n))
    _, perm = jax.lax.top_k(score, k)

    if c % 128 == 0:
        # Fused scalar-prefetch gather: no x_perm materialization.
        x_new = gather_scale(x, score, perm)
    else:
        # TODO(synk): C not lane-aligned would force masked stores and the
        # pallas_call dispatch overhead dominates at toy sizes -> XLA fusion.
        x_new = x[perm] * jnp.tanh(score[perm])[:, None]

    batch_new = batch[perm]
    edge_index_new, edge_attr_new = filter_adj(edge_index, edge_attr, perm, n)
    return x_new, edge_index_new, edge_attr_new, batch_new, perm


# --------------------------------- main -------------------------------------- #

def _ring_edge_index(n):
    src = jnp.arange(n, dtype=jnp.int32)
    dst = (src + 1) % n
    return jnp.concatenate(
        [jnp.stack([src, dst], axis=0), jnp.stack([dst, src], axis=0)], axis=1)


def _reference_score_bf16(x, w, b, edge_index, n):
    """Pure-JAX reference mirroring the kernel's bf16 streaming path."""
    np_ = _round_up(n, 512)
    a_t = normalized_adjacency_t(edge_index, n, np_)
    h = jnp.pad((x @ w)[:, 0], (0, np_ - n))[None, :].astype(jnp.bfloat16)
    s = jnp.dot(h, a_t, preferred_element_type=jnp.float32)[0, :n]
    return s + b[0, 0]


def _check_case(key, n, c, ratio):
    k_x, k_w = jax.random.split(key)
    x = jax.random.normal(k_x, (n, c), dtype=jnp.float32)
    edge_index = _ring_edge_index(n)
    w = jax.random.normal(k_w, (c, 1), dtype=jnp.float32) * jnp.sqrt(6.0 / (c + 1))
    b = jnp.full((1, 1), 0.1, dtype=jnp.float32)
    params = {"w": w, "b": b}

    outs = jax.block_until_ready(gcn_pool_forward(params, x, edge_index, ratio))
    x_new, edge_index_new, edge_attr_new, batch_new, perm = outs

    kk = int(math.ceil(ratio * n))
    score_ref = _reference_score_bf16(x, w, b, edge_index, n)

    # bf16-streamed score vs pure f32 reference (loose tolerance)
    a_hat = normalized_adjacency_t(edge_index, n, n, out_dtype=jnp.float32).T
    score_f32 = (a_hat @ (x @ w))[:, 0] + b[0, 0]
    assert jnp.allclose(score_ref, score_f32, atol=5e-2, rtol=5e-2)

    # selected scores must match the reference top-k values (tie/order robust)
    vals_ref, _ = jax.lax.top_k(score_ref, kk)
    assert jnp.allclose(jnp.sort(score_ref[perm]), jnp.sort(vals_ref),
                        atol=1e-3, rtol=1e-3)

    assert x_new.shape == (kk, c)
    # rebuild pooled features from the returned perm (order-robust check)
    x_ref = x[perm] * jnp.tanh(score_ref[perm])[:, None]
    assert jnp.allclose(x_new, x_ref, atol=2e-3, rtol=2e-3)
    assert batch_new.shape == (kk,)
    assert edge_index_new.shape == edge_index.shape


if __name__ == "__main__":
    key = jax.random.PRNGKey(0)
    k1, k2, k3 = jax.random.split(key, 3)
    # tiny case (matches the original spec sizes): XLA-fused pooling epilogue
    _check_case(k1, n=16, c=4, ratio=0.5)
    # lane-dense channels: Pallas fused gather+tanh epilogue, 2x1 score grid
    _check_case(k2, n=384, c=128, ratio=0.5)
    # multi-tile reduction: 3x3 score grid, Buffered(3) A_hat^T stream,
    # accumulator init/writeback across reduction tiles
    _check_case(k3, n=1100, c=128, ratio=0.5)
    print("KERNEL_OK")
</pallas_src>

<mosaic_0001>
module attributes {stable_mosaic.version = 11 : i64} {
  func.func @_score_kernel(%arg0: i32, %arg1: i32, %arg2: memref<1xf32, #tpu.memory_space<smem>>, %arg3: memref<1x512xbf16, #tpu.memory_space<vmem>>, %arg4: memref<512x256xbf16, #tpu.memory_space<vmem>>, %arg5: memref<1x256xf32, #tpu.memory_space<vmem>>, %arg6: memref<1x256xf32, #tpu.memory_space<vmem>>) attributes {dimension_semantics = [#tpu.dimension_semantics<parallel>, #tpu.dimension_semantics<arbitrary>], iteration_bounds = array<i64: 2, 1>, scalar_prefetch = 0 : i64, scratch_operands = 1 : i64, tpu.core_type = #tpu.core_type<tc>, window_params = [{transform_indices = @transform_0, window_bounds = array<i64: 1>}, {pipeline_mode = #tpu.pipeline_mode<synchronous>, transform_indices = @transform_1, window_bounds = array<i64: 1, 512>}, {transform_indices = @transform_2, window_bounds = array<i64: 512, 256>}, {transform_indices = @transform_3, window_bounds = array<i64: 1, 256>}]} {
    %c0_i32 = arith.constant 0 : i32
    %0 = arith.cmpi eq, %arg1, %c0_i32 : i32
    %1 = arith.extui %0 : i1 to i32
    %c0_i32_0 = arith.constant 0 : i32
    %2 = arith.cmpi ne, %1, %c0_i32_0 : i32
    scf.if %2 {
      %cst_9 = arith.constant 0.000000e+00 : f32
      %15 = vector.broadcast %cst_9 : f32 to vector<1x256xf32>
      %c0_10 = arith.constant 0 : index
      %c0_11 = arith.constant 0 : index
      %16 = vector.load %arg6[%c0_10, %c0_11] : memref<1x256xf32, #tpu.memory_space<vmem>>, vector<1x256xf32>
      tpu.vector_store %arg6[%c0_10, %c0_11], %15 {strides = array<i32>} : memref<1x256xf32, #tpu.memory_space<vmem>>, vector<1x256xf32>,
    } else {
    }
    %c512_i32 = arith.constant 512 : i32
    %3 = arith.muli %arg1, %c512_i32 : i32
    %4 = tpu.assume_multiple %3, 512 : i32
    %c0 = arith.constant 0 : index
    %5 = arith.index_cast %4 : i32 to index
    %6 = vector.load %arg3[%c0, %5] : memref<1x512xbf16, #tpu.memory_space<vmem>>, vector<1x512xbf16>
    %c0_1 = arith.constant 0 : index
    %c0_2 = arith.constant 0 : index
    %7 = vector.load %arg6[%c0_1, %c0_2] : memref<1x256xf32, #tpu.memory_space<vmem>>, vector<1x256xf32>
    %c0_3 = arith.constant 0 : index
    %c0_4 = arith.constant 0 : index
    %8 = vector.load %arg4[%c0_3, %c0_4] : memref<512x256xbf16, #tpu.memory_space<vmem>>, vector<512x256xbf16>
    %cst = arith.constant dense<0.000000e+00> : vector<1x256xf32>
    %9 = tpu.matmul %6, %8, %cst {dimension_numbers = #tpu.dot_dimension_numbers<[1], [0], [0], [1], [0, 0, 1, 1], [], []>} : vector<1x512xbf16>, vector<512x256xbf16>, vector<1x256xf32> -> vector<1x256xf32>
    %10 = arith.addf %7, %9 : vector<1x256xf32>
    %c0_5 = arith.constant 0 : index
    %c0_6 = arith.constant 0 : index
    %11 = vector.load %arg6[%c0_5, %c0_6] : memref<1x256xf32, #tpu.memory_space<vmem>>, vector<1x256xf32>
    tpu.vector_store %arg6[%c0_5, %c0_6], %10 {strides = array<i32>} : memref<1x256xf32, #tpu.memory_space<vmem>>, vector<1x256xf32>,
    %c0_i32_7 = arith.constant 0 : i32
    %12 = arith.cmpi eq, %arg1, %c0_i32_7 : i32
    %13 = arith.extui %12 : i1 to i32
    %c0_i32_8 = arith.constant 0 : i32
    %14 = arith.cmpi ne, %13, %c0_i32_8 : i32
    scf.if %14 {
      %c0_9 = arith.constant 0 : index
      %c0_10 = arith.constant 0 : index
      %15 = vector.load %arg6[%c0_9, %c0_10] : memref<1x256xf32, #tpu.memory_space<vmem>>, vector<1x256xf32>
      %c0_11 = arith.constant 0 : index
      %16 = memref.load %arg2[%c0_11] : memref<1xf32, #tpu.memory_space<smem>>
      %17 = vector.broadcast %16 : f32 to vector<1x256xf32>
      %18 = arith.addf %15, %17 : vector<1x256xf32>
      %c0_12 = arith.constant 0 : index
      %c0_13 = arith.constant 0 : index
      %19 = vector.load %arg5[%c0_12, %c0_13] : memref<1x256xf32, #tpu.memory_space<vmem>>, vector<1x256xf32>
      tpu.vector_store %arg5[%c0_12, %c0_13], %18 {strides = array<i32>} : memref<1x256xf32, #tpu.memory_space<vmem>>, vector<1x256xf32>,
    } else {
    }
    return
  }
  func.func @transform_0(%arg0: i32, %arg1: i32) -> i32 {
    %c0_i32 = arith.constant 0 : i32
    %c0_i32_0 = arith.constant 0 : i32
    return %c0_i32 : i32
  }
  func.func @transform_1(%arg0: i32, %arg1: i32) -> (i32, i32) {
    %c0_i32 = arith.constant 0 : i32
    %c0_i32_0 = arith.constant 0 : i32
    %c0_i32_1 = arith.constant 0 : i32
    return %c0_i32, %c0_i32_0 : i32, i32
  }
  func.func @transform_2(%arg0: i32, %arg1: i32) -> (i32, i32) {
    %c0_i32 = arith.constant 0 : i32
    return %arg1, %arg0 : i32, i32
  }
  func.func @transform_3(%arg0: i32, %arg1: i32) -> (i32, i32) {
    %c0_i32 = arith.constant 0 : i32
    %c0_i32_0 = arith.constant 0 : i32
    return %c0_i32, %arg0 : i32, i32
  }
}

</mosaic_0001>

<bundles_post_ra>
// kernel: tpu_custom_call.1
= control target key start
LH: loop header
LB: loop body
LE: loop exit
PB: predicated region body
PF: predicated region fallthrough
CT: control target
= control target key end

     0   :  { %s1551_s0 = inlined_call_operand.<no memory space> [shape: f32[1], index: 0, kind: input, shape index: {}]   ;;  %s1552_s1 = inlined_call_operand.hbm [shape: bf16[1,512], index: 1, kind: input, shape index: {}]   ;;  %s1553_s2 = inlined_call_operand.hbm [shape: bf16[512,512], index: 2, kind: input, shape index: {}]   ;;  %s1554_s3 = inlined_call_operand.hbm [shape: f32[1,512], index: 3, kind: output, shape index: {}]  }
   0x1   :  { %8 = sst [smem:[#allocation3]] %s1551_s0 }
   0x2   :  { %9 = vsyncpa [#allocation5], 0 }
   0x3   :  { %10 = vsyncpa [#allocation8], 0 }
   0x4   :  { %12 = vsyncpa [#allocation8 + $0x1], 0 }
   0x5   :  { %13 = vsyncpa [#allocation6], 0 }
   0x6   :  { %15 = vsyncpa [#allocation6 + $0x1], 0  ;;  %s1303_s14 = smov 0   ;;  %s1305_s15 = smov 0  }
   0x7   :  { %s1307_s16 = smov 0   ;;  %s1309_s17 = smov 0  }
   0x8   :  { %s1311_s18 = smov 0   ;;  %s1313_s19 = smov 0  }
   0x9 LB: > { %s874_s0 = sadd.s32 4294967295, %s1270_s19   ;;  %s875_s20 = sadd.s32 4294967294, %s1270_s19   ;;  %s1270_s19 = sphi %s1313_s19, %s21_s19   ;;  %s1266_s18 = sphi %s1311_s18, %s1575_s18   ;;  %s1262_s17 = sphi %s1309_s17, %s1574_s17   ;;  %s1258_s16 = sphi %s1307_s16, %s1573_s16   ;;  %s1254_s15 = sphi %s1305_s15, %s1572_s15   ;;  %s1250_s14 = sphi %s1303_s14, %s1571_s14  }
   0xa   : > { %s84_s21 = sadd.s32 1, %s1258_s16  ;;  %p91_p0 = scmp.ne.s32.totalorder %s1258_s16, %s1254_s15 }
   0xb   : > { %p92_p1 = scmp.eq.s32.totalorder %s1270_s19, 0  ;;  %p97_p2 = scmp.ne.s32.totalorder %s1254_s15, %s1250_s14 }
   0xc   : > { %p1341_p3 = scmp.eq.s32.totalorder %s874_s0, 0  ;;  %p121_p4 = scmp.eq.s32.totalorder %s874_s0, 1 }
   0xd   : > { %p1345_p5 = por %p92_p1, %p91_p0  ;;  %p127_p6 = scmp.eq.s32.totalorder %s875_s20, 1 }
   0xe   : > { %p1351_p7 = por %p1341_p3, %p97_p2  ;;  %p1355_p8 = por %p121_p4, %p91_p0 }
   0xf   : > { %p1359_p9 = por %p127_p6, %p97_p2  ;;  %p876_p10 = scmp.ge.s32.totalorder %s1270_s19, 1 }
  0x10   : > { %s1559_s24 = scalar_select %p1351_p7, 1, 0 }
  0x11   : > { %s1560_s25 = scalar_select %p1355_p8, 1, 0 }
  0x12   : > { %s1561_s26 = scalar_select %p1359_p9, 1, 0 }
  0x13   : > { %p134_p11 = scmp.lt.s32.totalorder %s1270_s19, 3  ;;  %s1272_s28 = smov [#allocation4]  }
  0x14   : > { %s150_s29 = sshll.u32 %s1272_s28, 4  ;;  %p979_p1 = scmp.lt.s32.totalorder %s1270_s19, 2  ;;  %s151_s29 = int_to_ptr.vmem [resolvable:$true] %s150_s29 }
  0x15   : > { %p1366_p13 = pnand %p876_p10, %p134_p11  ;;  %s33_s5 = sadd.s32 1, %s1266_s18 }
  0x16   : > { %p1375_p4 = pnand %p979_p1, %p1345_p5  ;;  %p35_p6 = scmp.ge.s32.totalorder %s33_s5, 2 }
  0x17   : > { %p966_p0 = pneg %p1366_p13  ;;  %s161_s6 = sand.u32 1, %s1258_s16  }
  0x18   : > { %s1143_s7 = scalar_lea.vmem %s151_s29, 64  ;;  %p1151_p8 = scmp.lt.s32.totalorder %s151_s29, %s151_s29 }
  0x19   : > { %p1381_p2 = pnand %p966_p0, %p1341_p3  ;;  %p1144_p11 = scmp.ne.s32.totalorder %s151_s29, %s1143_s7 }
  0x1a   : > { %p1152_p5 = scmp.lt.s32.totalorder %s1143_s7, %s1143_s7 }
  0x1b   : > { %p1134_p10 = pneg %p1381_p2 }
  0x1c   : > { %p1153_p1 = por %p1152_p5, %p1151_p8 }
  0x1d   : > { %p1146_p12 = pnand %p1144_p11, %p1134_p10 }
  0x1f   : > { %p1147_p9 = pneg %p1146_p12 }
  0x21   : > { %p1154_p7 = pnand %p1153_p1, %p1147_p9 }
  0x23   : > { %1157 = shalt.err (!%p1154_p7)
}
  0x24   : > { %969 = dma.hbm_to_vmem [thread:$0]  (!%p1381_p2), %s1552_s1, 64, %s151_s29, [#allocation5]  }
  0x25   : > { %s1577_s5 = smov (%p35_p6, %s33_s5), 0  ;;  %s879_s10 = sshll.u32 %s161_s6, 9 }
  0x26   : > { %s80_s11 = ssub.s32 %s1266_s18, %s1577_s5  ;;  %s956_s12 = sshll.u32 %s1266_s18, 7 }
  0x27   : > { %p82_p12 = scmp.eq.s32.totalorder %s80_s11, 0  ;;  %s174_s20 = scalar_lea.hbm %s1553_s2, %s956_s12 }
  0x28   : > { %s165_s23 = scalar_lea.vmem [#allocation7], %s879_s10  ;;  %s162_s7 = scalar_lea.sflag [#allocation8], %s161_s6 }
  0x29   : > { %s175_s28 = sshll.u32 %s165_s23, 4  ;;  %p1160_p7 = pneg %p1375_p4  ;;  %s176_s28 = int_to_ptr.vmem [resolvable:$true] %s175_s28 }
  0x2a   : > { %s1405_s4 = scalar_select %p82_p12, %s1258_s16, %s84_s21  }
  0x2b   : > { %s1171_s29 = scalar_lea.vmem %s176_s28, 8192  ;;  %s1273_s8 = smov [#allocation7]  }
  0x2c   : > { %p1172_p8 = scmp.ne.s32.totalorder %s176_s28, %s1171_s29  ;;  %s1176_s9 = sshll.u32 %s1273_s8, 4  ;;  %s1177_s9 = int_to_ptr.vmem [resolvable:$false] %s1176_s9 }
  0x2d   : > { %s1178_s11 = scalar_lea.vmem %s1177_s9, 16384  ;;  %p1179_p2 = scmp.lt.s32.totalorder %s176_s28, %s1177_s9 }
  0x2e   : > { %p1174_p9 = pnand %p1172_p8, %p1160_p7  ;;  %p1180_p6 = scmp.lt.s32.totalorder %s1178_s11, %s1171_s29 }
  0x30   : > { %p1175_p0 = pneg %p1174_p9  ;;  %p1181_p10 = por %p1180_p6, %p1179_p2 }
  0x32   : > { %p1182_p11 = pnand %p1181_p10, %p1175_p0 }
  0x34   : > { %1185 = shalt.err (!%p1182_p11)
}
  0x35   : > { %s1274_s10 = smov 256   ;;  %s1275_s21 = smov 128  }
  0x36   : > { %s1276_s12 = smov 8   ;;  %187 = sbr.rel (%p1366_p13) target bundleno = 358 (0x166), region = 32 }
  0x37   : > { %973 = dma.hbm_to_vmem [thread:$0]  (!%p1375_p4), %s174_s20, 8192, %s176_s28, %s162_s7, %s1274_s10, %s1275_s21, %s1276_s12  }
  0x3b   : > { %1237 = dma.done.wait (%p1341_p3), [#allocation5], 64  }
  0x3c   : > { %1239 = vsyncadd (%p1341_p3), [#allocation5], 4294967232  ;;  %s1418_s6 = sand.u32 1, %s1254_s15   ;;  %p1565_p4 = scmp.ne.s32.totalorder %s1559_s24, 0 }
  0x3d   : > { %s884_s13 = sshll.u32 %s1418_s6, 9  ;;  %s194_s0 = scalar_lea.sflag [#allocation8], %s1418_s6 }
  0x3e   : > { %s1422_s23 = scalar_lea.vmem [#allocation7], %s884_s13 }
  0x3f   : > { %1241 = dma.done.wait (%p1565_p4), %s194_s0, 8192  }
  0x40   : > { %1243 = vsyncadd (%p1565_p4), %s194_s0, 4294959104  ;;  %v1036_v0 = vld [vmem:[%s1422_s23 + $0x74] ss:$8 sps:$4 sm:$0xff]   ;;  %v1040_v2 = vld [vmem:[%s1422_s23 + $0x70] ss:$8 sps:$4 sm:$0xff]   ;;  %v227_v38 = vlaneseq  ;;  %s761_s22 = sld [smem:[#allocation3]] }
  0x41   : > { %v1038_v1 = vld [vmem:[%s1422_s23 + $0x174] ss:$8 sps:$4 sm:$0xff]   ;;  %651 = vmatprep.subr.bf16.mxu0 %v1036_v0  ;;  %v1041_v3 = vld [vmem:[%s1422_s23 + $0x170] ss:$8 sps:$4 sm:$0xff]   ;;  %v1042_v4 = vld [vmem:[%s1422_s23 + $0x64] ss:$8 sps:$4 sm:$0xff]  }
  0x42   : > { %692 = vmatprep.subr.bf16.mxu1 %v1038_v1  ;;  %652 = vmatpush1.bf16.msra.mxu0 %v1040_v2  ;;  %v1044_v5 = vld [vmem:[%s1422_s23 + $0x164] ss:$8 sps:$4 sm:$0xff]   ;;  %v1046_v6 = vld [vmem:[%s1422_s23 + $0x60] ss:$8 sps:$4 sm:$0xff]   ;;  %v1048_v8 = vld [vmem:[%s1422_s23 + $0x54] ss:$8 sps:$4 sm:$0xff]  }
  0x43   : > { %693 = vmatpush1.bf16.msra.mxu1 %v1041_v3  ;;  %653 = vmatprep.subr.bf16.mxu0 %v1042_v4  ;;  %v1047_v7 = vld [vmem:[%s1422_s23 + $0x160] ss:$8 sps:$4 sm:$0xff]   ;;  %v1050_v9 = vld [vmem:[%s1422_s23 + $0x154] ss:$8 sps:$4 sm:$0xff]   ;;  %v1052_v10 = vld [vmem:[%s1422_s23 + $0x50] ss:$8 sps:$4 sm:$0xff]  }
  0x44   : > { %694 = vmatprep.subr.bf16.mxu1 %v1044_v5  ;;  %v1053_v11 = vld [vmem:[%s1422_s23 + $0x150] ss:$8 sps:$4 sm:$0xff]   ;;  %v1054_v12 = vld [vmem:[%s1422_s23 + $0x44] ss:$8 sps:$4 sm:$0xff]   ;;  %v1058_v14 = vld [vmem:[%s1422_s23 + $0x40] ss:$8 sps:$4 sm:$0xff]  }
  0x45   : > { %v1056_v13 = vld [vmem:[%s1422_s23 + $0x144] ss:$8 sps:$4 sm:$0xff]   ;;  %v1059_v15 = vld [vmem:[%s1422_s23 + $0x140] ss:$8 sps:$4 sm:$0xff]   ;;  %v1060_v16 = vld [vmem:[%s1422_s23 + $0x34] ss:$8 sps:$4 sm:$0xff]  }
  0x46   : > { %654 = vmatpush1.bf16.msra.mxu0 %v1046_v6  ;;  %v1062_v17 = vld [vmem:[%s1422_s23 + $0x134] ss:$8 sps:$4 sm:$0xff]   ;;  %v1064_v18 = vld [vmem:[%s1422_s23 + $0x30] ss:$8 sps:$4 sm:$0xff]   ;;  %v1066_v20 = vld [vmem:[%s1422_s23 + $0x24] ss:$8 sps:$4 sm:$0xff]  }
  0x47   : > { %695 = vmatpush1.bf16.msra.mxu1 %v1047_v7  ;;  %655 = vmatprep.subr.bf16.mxu0 %v1048_v8  ;;  %v1065_v19 = vld [vmem:[%s1422_s23 + $0x130] ss:$8 sps:$4 sm:$0xff]   ;;  %v1068_v21 = vld [vmem:[%s1422_s23 + $0x124] ss:$8 sps:$4 sm:$0xff]   ;;  %v1070_v22 = vld [vmem:[%s1422_s23 + $0x20] ss:$8 sps:$4 sm:$0xff]  }
  0x48   : > { %696 = vmatprep.subr.bf16.mxu1 %v1050_v9  ;;  %v1071_v23 = vld [vmem:[%s1422_s23 + $0x120] ss:$8 sps:$4 sm:$0xff]   ;;  %v1072_v24 = vld [vmem:[%s1422_s23 + $0x14] ss:$8 sps:$4 sm:$0xff]   ;;  %v1076_v26 = vld [vmem:[%s1422_s23 + $0x10] ss:$8 sps:$4 sm:$0xff]  }
  0x49   : > { %v1074_v25 = vld [vmem:[%s1422_s23 + $0x114] ss:$8 sps:$4 sm:$0xff]   ;;  %v1077_v27 = vld [vmem:[%s1422_s23 + $0x110] ss:$8 sps:$4 sm:$0xff]   ;;  %v1078_v28 = vld [vmem:[%s1422_s23 + $0x4] ss:$8 sps:$4 sm:$0xff]  }
  0x4a   : > { %656 = vmatpush1.bf16.msra.mxu0 %v1052_v10  ;;  %v1080_v29 = vld [vmem:[%s1422_s23 + $0x104] ss:$8 sps:$4 sm:$0xff]   ;;  %v1082_v30 = vld [vmem:[%s1422_s23] ss:$8 sps:$4 sm:$0xff]   ;;  %v1084_v32 = vld [vmem:[%s1422_s23 + $0xf4] ss:$8 sps:$4 sm:$0xff]  }
  0x4b   : > { %697 = vmatpush1.bf16.msra.mxu1 %v1053_v11  ;;  %657 = vmatprep.subr.bf16.mxu0 %v1054_v12  ;;  %v1083_v31 = vld [vmem:[%s1422_s23 + $0x100] ss:$8 sps:$4 sm:$0xff]   ;;  %v1086_v33 = vld [vmem:[%s1422_s23 + $0x1f4] ss:$8 sps:$4 sm:$0xff]   ;;  %v1088_v34 = vld [vmem:[%s1422_s23 + $0xf0] ss:$8 sps:$4 sm:$0xff]  }
  0x4c   : > { %698 = vmatprep.subr.bf16.mxu1 %v1056_v13  ;;  %v1089_v35 = vld [vmem:[%s1422_s23 + $0x1f0] ss:$8 sps:$4 sm:$0xff]   ;;  %v1090_v36 = vld [vmem:[%s1422_s23 + $0xe4] ss:$8 sps:$4 sm:$0xff]   ;;  %v1277_v39 = vmov 1966171168  }
  0x4d   : > { %v1092_v37 = vld [vmem:[%s1422_s23 + $0x1e4] ss:$8 sps:$4 sm:$0xff]   ;;  %v312_v40 = vunpack.c.l.s4 %v1277_v39  ;;  %v1094_v41 = vld [vmem:[%s1422_s23 + $0xe0] ss:$8 sps:$4 sm:$0xff]   ;;  %v1096_v43 = vld [vmem:[%s1422_s23 + $0xd4] ss:$8 sps:$4 sm:$0xff]  }
  0x4e   : > { %658 = vmatpush1.bf16.msra.mxu0 %v1058_v14  ;;  %v1095_v42 = vld [vmem:[%s1422_s23 + $0x1e0] ss:$8 sps:$4 sm:$0xff]   ;;  %v1098_v44 = vld [vmem:[%s1422_s23 + $0x1d4] ss:$8 sps:$4 sm:$0xff]   ;;  %v315_v46 = vshrl.u32 %v227_v38, 7  ;;  %vm1498_vm0 = vcmp.lt.s32.totalorder %v227_v38, 256 }
  0x4f   : > { %699 = vmatpush1.bf16.msra.mxu1 %v1059_v15  ;;  %659 = vmatprep.subr.bf16.mxu0 %v1060_v16  ;;  %v313_v45 = vunpack.c.0.s8 %v312_v40  ;;  %v1100_v47 = vld [vmem:[%s1422_s23 + $0xd0] ss:$8 sps:$4 sm:$0xff]   ;;  %v1102_v49 = vld [vmem:[%s1422_s23 + $0xc4] ss:$8 sps:$4 sm:$0xff]   ;;  %v1106_v53 = vld [vmem:[%s1422_s23 + $0xc0] ss:$8 sps:$4 sm:$0xff]  }
  0x50   : > { %700 = vmatprep.subr.bf16.mxu1 %v1062_v17  ;;  %v1101_v48 = vld [vmem:[%s1422_s23 + $0x1d0] ss:$8 sps:$4 sm:$0xff]   ;;  %v1104_v50 = vld [vmem:[%s1422_s23 + $0x1c4] ss:$8 sps:$4 sm:$0xff]   ;;  %v1107_v54 = vld [vmem:[%s1422_s23 + $0x1c0] ss:$8 sps:$4 sm:$0xff]  }
  0x51   : > { %v1475_v51 = vsub.s32 %v313_v45, %v315_v46  ;;  %v886_v52 = vld.sshfl [vmem:[#allocation4] sm:$0x33 pattern:$0x75316420]  ;;  %v1112_v59 = vld [vmem:[%s1422_s23 + $0xb0] ss:$8 sps:$4 sm:$0xff]  }
  0x52   : > { %660 = vmatpush1.bf16.msra.mxu0 %v1064_v18  ;;  %v310_v55 = vcombine.high %v886_v52, %v886_v52  ;;  %v1108_v56 = vld [vmem:[%s1422_s23 + $0xb4] ss:$8 sps:$4 sm:$0xff]   ;;  %v1113_v60 = vld [vmem:[%s1422_s23 + $0x1b0] ss:$8 sps:$4 sm:$0xff]   ;;  %v1114_v62 = vld [vmem:[%s1422_s23 + $0xa4] ss:$8 sps:$4 sm:$0xff]  }
  0x53   : > { %701 = vmatpush1.bf16.msra.mxu1 %v1065_v19  ;;  %661 = vmatprep.subr.bf16.mxu0 %v1066_v20  ;;  %v1110_v57 = vld [vmem:[%s1422_s23 + $0x1b4] ss:$8 sps:$4 sm:$0xff]   ;;  %v1116_v63 = vld [vmem:[%s1422_s23 + $0x1a4] ss:$8 sps:$4 sm:$0xff]   ;;  %v1118_v0 = vld [vmem:[%s1422_s23 + $0xa0] ss:$8 sps:$4 sm:$0xff]   ;;  %v317_v8 = vrot.slane %v886_v52, %v1475_v51 }
  0x54   : > { %702 = vmatprep.subr.bf16.mxu1 %v1068_v21  ;;  %v324_v58 = vrot.slane %v310_v55, %v1475_v51  ;;  %v1119_v1 = vld [vmem:[%s1422_s23 + $0x1a0] ss:$8 sps:$4 sm:$0xff]   ;;  %v1120_v2 = vld [vmem:[%s1422_s23 + $0x94] ss:$8 sps:$4 sm:$0xff]   ;;  %v1124_v4 = vld [vmem:[%s1422_s23 + $0x90] ss:$8 sps:$4 sm:$0xff]  }
  0x55   : > { %v1122_v3 = vld [vmem:[%s1422_s23 + $0x194] ss:$8 sps:$4 sm:$0xff]   ;;  %v1125_v5 = vld [vmem:[%s1422_s23 + $0x190] ss:$8 sps:$4 sm:$0xff]   ;;  %v1126_v6 = vld [vmem:[%s1422_s23 + $0x84] ss:$8 sps:$4 sm:$0xff]   ;;  %v325_v11 = vcombine.high %v317_v8, %v317_v8 }
  0x56   : > { %662 = vmatpush1.bf16.msra.mxu0 %v1070_v22  ;;  %v326_v61 = vcombine.high %v324_v58, %v324_v58  ;;  %683 = vmatprep.mubr.bf16.mxu0 %v324_v58  ;;  %v1128_v7 = vld [vmem:[%s1422_s23 + $0x184] ss:$8 sps:$4 sm:$0xff]   ;;  %v1130_v9 = vld [vmem:[%s1422_s23 + $0x80] ss:$8 sps:$4 sm:$0xff]   ;;  %v1278_v13 = vmov 0.0   ;;  %s885_s24 = sshll.u32 %s1418_s6, 1 }
  0x57   : > { %703 = vmatpush1.bf16.msra.mxu1 %v1071_v23  ;;  %663 = vmatprep.subr.bf16.mxu0 %v1072_v24  ;;  %v1131_v10 = vld [vmem:[%s1422_s23 + $0x180] ss:$8 sps:$4 sm:$0xff]   ;;  %231 = vst.msk [vmem:[#allocation2] sm:$0x3] %vm1498_vm0, %v1278_v13  ;;  %s957_s27 = sshll.u32 %s1262_s17, 5  ;;  %s219_s30 = scalar_lea.vmem [#allocation9], %s885_s24 }
  0x58   : > { %704 = vmatprep.subr.bf16.mxu1 %v1074_v25  ;;  %724 = vmatprep.mubr.bf16.mxu1 %v326_v61  ;;  %s780_s20 = sshll.u32 %s219_s30, 4  ;;  %s778_s29 = scalar_lea.hbm %s1554_s3, %s957_s27  ;;  %s781_s20 = int_to_ptr.vmem [resolvable:$true] %s780_s20 }
  0x59   : > { %s766_s8 = scalar_lea.sflag [#allocation6], %s1418_s6  ;;  %s1186_s9 = scalar_lea.vmem %s781_s20, 32 }
  0x5a   : > { %664 = vmatpush1.bf16.msra.mxu0 %v1076_v26  ;;  %p1187_p3 = scmp.ne.s32.totalorder %s781_s20, %s1186_s9  ;;  %p1568_p13 = scmp.ne.s32.totalorder %s1560_s25, 0 }
  0x5b   : > { %705 = vmatpush1.bf16.msra.mxu1 %v1077_v27  ;;  %665 = vmatprep.subr.bf16.mxu0 %v1078_v28  ;;  %s1279_s11 = smov [#allocation9]  }
  0x5c   : > { %706 = vmatprep.subr.bf16.mxu1 %v1080_v29  ;;  %v762_v29 = vstv %s761_s22  ;;  %p1188_p5 = pnand %p1187_p3, %p1568_p13  ;;  %s1190_s17 = sshll.u32 %s1279_s11, 4  ;;  %s1191_s17 = int_to_ptr.vmem [resolvable:$false] %s1190_s17 }
  0x5d   : > { %s1192_s10 = scalar_lea.vmem %s1191_s17, 64  ;;  %p1193_p12 = scmp.lt.s32.totalorder %s781_s20, %s1191_s17 }
  0x5e   : > { %666 = vmatpush1.bf16.msra.mxu0 %v1082_v30  ;;  %v237_v26 = vld [vmem:[#allocation2] sm:$0x3]  ;;  %p1189_p1 = pneg %p1188_p5  ;;  %p1194_p7 = scmp.lt.s32.totalorder %s1192_s10, %s1186_s9 }
  0x5f   : > { %707 = vmatpush1.bf16.msra.mxu1 %v1083_v31  ;;  %667 = vmatprep.subr.bf16.mxu0 %v1084_v32 }
  0x60   : > { %708 = vmatprep.subr.bf16.mxu1 %v1086_v33  ;;  %p1195_p8 = por %p1194_p7, %p1193_p12 }
  0x62   : > { %668 = vmatpush2.bf16.msra.mxu0 %v1088_v34  ;;  %p1196_p9 = pnand %p1195_p8, %p1189_p1 }
  0x63   : > { %709 = vmatpush2.bf16.msra.mxu1 %v1089_v35  ;;  %669 = vmatprep.subr.bf16.mxu0 %v1090_v36 }
  0x64   : > { %710 = vmatprep.subr.bf16.mxu1 %v1092_v37 }
  0x66   : > { %670 = vmatpush2.bf16.msra.mxu0 %v1094_v41 }
  0x67   : > { %711 = vmatpush2.bf16.msra.mxu1 %v1095_v42  ;;  %671 = vmatprep.subr.bf16.mxu0 %v1096_v43 }
  0x68   : > { %712 = vmatprep.subr.bf16.mxu1 %v1098_v44 }
  0x6a   : > { %672 = vmatpush2.bf16.msra.mxu0 %v1100_v47 }
  0x6b   : > { %713 = vmatpush2.bf16.msra.mxu1 %v1101_v48  ;;  %673 = vmatprep.subr.bf16.mxu0 %v1102_v49 }
  0x6c   : > { %714 = vmatprep.subr.bf16.mxu1 %v1104_v50 }
  0x6e   : > { %674 = vmatpush2.bf16.msra.mxu0 %v1106_v53 }
  0x6f   : > { %715 = vmatpush2.bf16.msra.mxu1 %v1107_v54  ;;  %675 = vmatprep.subr.bf16.mxu0 %v1108_v56 }
  0x70   : > { %716 = vmatprep.subr.bf16.mxu1 %v1110_v57 }
  0x72   : > { %676 = vmatpush2.bf16.msra.mxu0 %v1112_v59 }
  0x73   : > { %717 = vmatpush2.bf16.msra.mxu1 %v1113_v60  ;;  %677 = vmatprep.subr.bf16.mxu0 %v1114_v62 }
  0x74   : > { %718 = vmatprep.subr.bf16.mxu1 %v1116_v63 }
  0x76   : > { %678 = vmatpush2.bf16.msra.mxu0 %v1118_v0 }
  0x77   : > { %719 = vmatpush2.bf16.msra.mxu1 %v1119_v1  ;;  %679 = vmatprep.subr.bf16.mxu0 %v1120_v2 }
  0x78   : > { %720 = vmatprep.subr.bf16.mxu1 %v1122_v3 }
  0x7a   : > { %680 = vmatpush2.bf16.msra.mxu0 %v1124_v4 }
  0x7b   : > { %721 = vmatpush2.bf16.msra.mxu1 %v1125_v5  ;;  %681 = vmatprep.subr.bf16.mxu0 %v1126_v6 }
  0x7c   : > { %722 = vmatprep.subr.bf16.mxu1 %v1128_v7 }
  0x7e   : > { %682 = vmatpush2.bf16.msra.mxu0 %v1130_v9 }
  0x7f   : > { %723 = vmatpush2.bf16.msra.mxu1 %v1131_v10 }
  0x81   : > { %684 = vmatmul.mubr.bf16.vlgmr.msra.gmra.mxu0 %v317_v8 }
  0x82   : > { %725 = vmatmul.mubr.bf16.vlgmr.msra.gmra.mxu1 %v325_v11 }
 0x141   : > { %v685_v14 = vpop.f32.mrf.mxu0 }
 0x142   : > { %v726_v15 = vpop.f32.mrf.mxu1 }
 0x143   : > { %v687_v16 = vpop.f32.mrf.mxu0  ;;  %v727_v18 = vadd.f32 %v726_v15, %v685_v14 }
 0x144   : > { %v728_v17 = vpop.f32.mrf.mxu1 }
 0x145   : > { %v729_v19 = vadd.f32 %v728_v17, %v687_v16  ;;  %v689_v20 = vpop.f32.mrf.mxu0 }
 0x146   : > { %v730_v21 = vpop.f32.mrf.mxu1 }
 0x147   : > { %v735_v22 = vcombine.low %v727_v18, %v729_v19  ;;  %v690_v23 = vpop.f32.mrf.mxu0 }
 0x148   : > { %v731_v24 = vpop.f32.mrf.mxu1 }
 0x149   : > { %v742_v25 = vrot.slane %v735_v22, %v1475_v51 }
 0x14b   : > { %v749_v27 = vrot.slane %v742_v25, %v1475_v51 }
 0x14d   : > { %v751_v28 = vadd.f32 %v749_v27, %v237_v26 }
 0x14f   : > { %756 = vst.msk [vmem:[#allocation2] sm:$0x3] %vm1498_vm0, %v751_v28 }
 0x156   : > { %v760_v30 = vld [vmem:[#allocation2] sm:$0x3] }
 0x157   : > { %v763_v31 = vadd.f32 %v762_v29, %v760_v30 }
 0x159   : > { %764 = vst.msk [vmem:[%s219_s30] sm:$0x3] %vm1498_vm0, %v763_v31 }
 0x15a   : > { %1199 = shalt.err (!%p1196_p9)
}
 0x15b   : > { %s1200_s21 = scalar_lea.hbm %s778_s29, 32  ;;  %s1204_s13 = scalar_lea.hbm %s1554_s3, 64 }
 0x15c   : > { %p1201_p0 = scmp.ne.s32.totalorder %s778_s29, %s1200_s21  ;;  %p1205_p10 = scmp.lt.s32.totalorder %s778_s29, %s1554_s3 }
 0x15d   : > { %p1206_p11 = scmp.lt.s32.totalorder %s1204_s13, %s1200_s21 }
 0x15e   : > { %p1202_p2 = pnand %p1201_p0, %p1568_p13 }
 0x15f   : > { %p1207_p4 = por %p1206_p11, %p1205_p10 }
 0x160   : > { %p1203_p6 = pneg %p1202_p2 }
 0x162   : > { %p1208_p3 = pnand %p1207_p4, %p1203_p6 }
 0x164   : > { %1211 = shalt.err (!%p1208_p3)
}
 0x165   : > { %964 = dma.vmem_to_hbm [thread:$0]  (%p1568_p13), %s781_s20, 32, %s778_s29, %s766_s8  }
 0x166 PF: > { %s792_s22 = sand.u32 1, %s1250_s14   ;;  %p1569_p5 = scmp.ne.s32.totalorder %s1561_s26, 0 }
 0x167   : > { %p1570_p1 = scmp.ge.s32.totalorder %s1270_s19, 2  ;;  %s793_s24 = scalar_lea.sflag [#allocation6], %s792_s22 }
 0x169   : > { %p975_p12 = pnand %p1570_p1, %p1569_p5 }
 0x16b   : > { %p976_p7 = pneg %p975_p12 }
 0x16d   : > { %1245 = dma.done.wait (%p976_p7), %s793_s24, 32  }
 0x16e   : > { %1247 = vsyncadd (%p976_p7), %s793_s24, 4294967264  ;;  %s21_s19 = sadd.s32 1, %s1270_s19   ;;  %s1571_s14 = smov %s1254_s15 }
 0x16f   : > { %p18_p8 = scmp.ge.s32.totalorder %s21_s19, 4   ;;  %s1572_s15 = smov %s1258_s16 }
 0x170   : > { %s1573_s16 = smov %s1405_s4  ;;  %s1574_s17 = smov %s1266_s18 }
 0x171   : > { %s1575_s18 = smov %s1577_s5  ;;  %20 = sbr.rel (!%p18_p8) target bundleno = 9 (0x9), region = 91 }
 0x176   :  { %798 = vsyncpa [#allocation5], 1 }
 0x177   :  { %800 = vsyncpa [#allocation5 + $0x1], 1 }
 0x178   :  { %801 = vsyncpa [#allocation8], 1 }
 0x179   :  { %803 = vsyncpa [#allocation8 + $0x1], 1 }
 0x17a   :  { %804 = vsyncpa [#allocation6], 1 }
 0x17b   :  { %806 = vsyncpa [#allocation6 + $0x1], 1 }

</bundles_post_ra>
